<compile_context>
chip_gen: v7x
topology: tpu7x:2x2x1
jax: 0.10.0
libtpu: 0.0.40
codegen_flags: <defaults>
</compile_context>

<pallas_src>
import jax
import jax.numpy as jnp
import numpy as np
from jax.experimental import pallas as pl
from jax.experimental.pallas import tpu as pltpu


# ----------------------------- Pallas kernels --------------------------------

def projection_kernel(x_ref, w1_ref, win_ref, pa_ref):
    """linear1 (C_in -> mid) followed by input_linear (mid -> 3*out_c)."""
    feats = jnp.dot(x_ref[0], w1_ref[...], preferred_element_type=jnp.float32)
    pa = jnp.dot(feats, win_ref[...], preferred_element_type=jnp.float32)
    pa_ref[0] = pa.astype(pa_ref.dtype)            # [phi | psi | alpha]


def attention_kernel(idx_ref, coords_ref, phi_ref, x_ref, src_ref,
                     wt1_ref, wt2_ref, wg1_ref, wg2_ref, w2_ref, y_ref):
    idx_kq = idx_ref[0, 0]          # (K, TN)  neighbour ids, k-major per tile
    coords = coords_ref[0]          # (TN, 3)  centre coords of this tile
    phi = phi_ref[0]                # (TN, out_c)
    x = x_ref[0]                    # (TN, C_in) residual input
    src = src_ref[0]                # (N, 3 + 2*out_c) fused gather source

    K, TN = idx_kq.shape
    N, _ = src.shape
    c3 = coords.shape[-1]
    out_c = phi.shape[-1]

    # ---- kNN gather: single fused one-hot matmul (K*TN, N) x (N, S) ---------
    iota_n = jax.lax.broadcasted_iota(jnp.int32, (K, TN, N), 2)
    onehot = (idx_kq[:, :, None] == iota_n).astype(jnp.float32).reshape(K * TN, N)
    gathered = jnp.dot(onehot, src, preferred_element_type=jnp.float32)   # (K*TN, S)

    knn_coords = gathered[:, :c3]
    psi_knn = gathered[:, c3:c3 + out_c]
    alpha_knn = gathered[:, c3 + out_c:]

    coords_rep = jnp.broadcast_to(coords[None], (K, TN, c3)).reshape(K * TN, c3)
    phi_rep = jnp.broadcast_to(phi[None], (K, TN, out_c)).reshape(K * TN, out_c)

    # ---- PositionEncoding: (centre - neighbour) -> Conv2d -> ReLU -> Conv2d --
    coords_space = coords_rep - knn_coords
    h = jnp.maximum(
        jnp.dot(coords_space, wt1_ref[...], preferred_element_type=jnp.float32), 0.0)
    delta = jnp.dot(h, wt2_ref[...], preferred_element_type=jnp.float32)   # (K*TN, out_c)

    # ---- mlp_gamma on (phi - psi_knn + delta) --------------------------------
    gamma_in = phi_rep - psi_knn + delta
    g = jnp.maximum(
        jnp.dot(gamma_in, wg1_ref[...], preferred_element_type=jnp.float32), 0.0)
    gamma = jnp.dot(g, wg2_ref[...], preferred_element_type=jnp.float32)   # (K*TN, out_c)

    # ---- softmax over K + weighted aggregation -------------------------------
    # Rows are k-major, so these reshapes are leading-dim splits (minor dims
    # untouched) and every reduction is over the leading axis: K-1 elementwise
    # VPU ops on (TN, out_c) slabs instead of cross-sublane XLU reductions.
    gamma3 = gamma.reshape(K, TN, out_c)
    ad3 = (alpha_knn + delta).reshape(K, TN, out_c)
    gmax = jnp.max(gamma3, axis=0, keepdims=True)
    ge = jnp.exp(gamma3 - gmax)
    denom = jnp.sum(ge, axis=0)                               # (TN, out_c)
    wsum = jnp.sum(ge * ad3, axis=0)                          # (TN, out_c)
    agg = wsum * pl.reciprocal(denom, approx=True)

    # ---- linear2 + residual ---------------------------------------------------
    out = jnp.dot(agg, w2_ref[...], preferred_element_type=jnp.float32)    # (TN, C_in)
    y_ref[0] = (out + x).astype(y_ref.dtype)


# ------------------------------- wrapper --------------------------------------

def point_transformer_block(x, coords, knn_idx, params, *, tile_n=None):
    B, N, C_in = x.shape
    C3 = coords.shape[-1]
    K = knn_idx.shape[-1]
    w1, win, wt1, wt2, wg1, wg2, w2 = params
    out_c = wt2.shape[1]
    S = C3 + 2 * out_c

    tn = tile_n if tile_n is not None else min(128, N)
    assert N % tn == 0 and tn % 8 == 0, "tile_n must divide N and be a multiple of 8"
    nt = N // tn

    cparams = pltpu.CompilerParams(
        dimension_semantics=("parallel", "parallel"),   # shard B and N-tiles
        vmem_limit_bytes=64 * 1024 * 1024,              # <= physical on v5e/v6e/v7x
    )

    tile_spec = lambda c: pl.BlockSpec((1, tn, c), lambda b, t: (b, t, 0))
    weight_spec = lambda w: pl.BlockSpec(w.shape, lambda b, t: (0, 0))

    # --- pass 1: pointwise projections (phi | psi | alpha) per N-tile --------
    pa = pl.pallas_call(
        projection_kernel,
        out_shape=jax.ShapeDtypeStruct((B, N, 3 * out_c), jnp.float32),
        grid=(B, nt),
        in_specs=[tile_spec(C_in), weight_spec(w1), weight_spec(win)],
        out_specs=tile_spec(3 * out_c),
        compiler_params=cparams,
    )(x, w1, win)

    # Cheap XLA glue: fused gather source [coords | psi | alpha] and phi slice.
    phi = pa[..., :out_c]                                    # (B, N, out_c)
    src_cat = jnp.concatenate([coords, pa[..., out_c:]], axis=-1)   # (B, N, S)

    # Cheap XLA glue: per-tile, k-major neighbour ids  (B, nt, K, tn).
    idx_km = jnp.transpose(knn_idx, (0, 2, 1)).reshape(B, K, nt, tn)
    idx_km = jnp.transpose(idx_km, (0, 2, 1, 3))

    # --- pass 2: gather + position encoding + attention + linear2 + residual --
    y = pl.pallas_call(
        attention_kernel,
        out_shape=jax.ShapeDtypeStruct((B, N, C_in), x.dtype),
        grid=(B, nt),
        in_specs=[
            pl.BlockSpec((1, 1, K, tn), lambda b, t: (b, t, 0, 0)),   # idx (k-major)
            tile_spec(C3),                                            # centre coords
            tile_spec(out_c),                                         # phi
            tile_spec(C_in),                                          # x (residual)
            pl.BlockSpec((1, N, S), lambda b, t: (b, 0, 0)),          # full-N source
            weight_spec(wt1), weight_spec(wt2),
            weight_spec(wg1), weight_spec(wg2), weight_spec(w2),
        ],
        out_specs=tile_spec(C_in),
        compiler_params=cparams,
    )(idx_km, coords, phi, x, src_cat, wt1, wt2, wg1, wg2, w2)
    return y


# ------------------------- plain-JAX glue & reference -------------------------

def k_nearest_neighbors(coords, k):
    # TODO(synk): kNN search (pairwise distances + top_k) stays in plain JAX glue.
    d = jnp.sum((coords[:, :, None, :] - coords[:, None, :, :]) ** 2, axis=-1)
    _, idx = jax.lax.top_k(-d, k)
    return idx.astype(jnp.int32)


def reference_forward(x, coords, knn_idx, params):
    w1, win, wt1, wt2, wg1, wg2, w2 = params
    out_c = wt2.shape[1]
    gather_b = jax.vmap(lambda v, i: v[i])   # (N,C),(N,K) -> (N,K,C), vmapped over B

    feats = x @ w1
    pa = feats @ win
    phi, psi, alpha = pa[..., :out_c], pa[..., out_c:2 * out_c], pa[..., 2 * out_c:]

    knn_coords = gather_b(coords, knn_idx)
    coords_space = coords[:, :, None, :] - knn_coords
    delta = jnp.maximum(coords_space @ wt1, 0.0) @ wt2

    psi_knn = gather_b(psi, knn_idx)
    alpha_knn = gather_b(alpha, knn_idx)
    gamma_in = phi[:, :, None, :] - psi_knn + delta
    gamma = jnp.maximum(gamma_in @ wg1, 0.0) @ wg2
    rho = jax.nn.softmax(gamma, axis=2)
    agg = jnp.sum(rho * (alpha_knn + delta), axis=2)
    return agg @ w2 + x


if __name__ == "__main__":
    B, N, C_in, mid, K = 2, 128, 8, 32, 8
    out_c = mid // 2
    coords_c = 3

    key = jax.random.PRNGKey(0)
    keys = jax.random.split(key, 9)
    x = jax.random.normal(keys[0], (B, N, C_in), jnp.float32)
    coords = jax.random.normal(keys[1], (B, N, coords_c), jnp.float32)

    def init_w(k, shape):
        return jax.random.normal(k, shape, jnp.float32) * 0.1

    params = (
        init_w(keys[2], (C_in, mid)),        # linear1            (Conv1d C_in -> mid)
        init_w(keys[3], (mid, 3 * out_c)),   # input_linear       (Conv1d mid -> 3*out)
        init_w(keys[4], (coords_c, out_c)),  # pe mlp_theta conv1 (Conv2d 3 -> out)
        init_w(keys[5], (out_c, out_c)),     # pe mlp_theta conv2 (Conv2d out -> out)
        init_w(keys[6], (out_c, out_c)),     # mlp_gamma conv1    (Conv2d out -> out)
        init_w(keys[7], (out_c, out_c)),     # mlp_gamma conv2    (Conv2d out -> out)
        init_w(keys[8], (out_c, C_in)),      # linear2            (Conv1d out -> C_in)
    )

    knn_idx = k_nearest_neighbors(coords, K)

    y = point_transformer_block(x, coords, knn_idx, params, tile_n=64)
    y = jax.block_until_ready(y)

    y_ref = reference_forward(x, coords, knn_idx, params)
    # approx reciprocal in the softmax denominator -> slightly looser tolerance
    np.testing.assert_allclose(np.asarray(y), np.asarray(y_ref), rtol=5e-3, atol=5e-3)
    print("KERNEL_OK")
</pallas_src>

<mosaic_0001>
module attributes {stable_mosaic.version = 11 : i64} {
  func.func @projection_kernel(%arg0: i32, %arg1: i32, %arg2: memref<1x64x8xf32, #tpu.memory_space<vmem>>, %arg3: memref<8x32xf32, #tpu.memory_space<vmem>>, %arg4: memref<32x48xf32, #tpu.memory_space<vmem>>, %arg5: memref<1x64x48xf32, #tpu.memory_space<vmem>>) attributes {dimension_semantics = [#tpu.dimension_semantics<parallel>, #tpu.dimension_semantics<parallel>], iteration_bounds = array<i64: 2, 2>, scalar_prefetch = 0 : i64, scratch_operands = 0 : i64, tpu.core_type = #tpu.core_type<tc>, window_params = [{transform_indices = @transform_0, window_bounds = array<i64: 1, 64, 8>}, {pipeline_mode = #tpu.pipeline_mode<synchronous>, transform_indices = @transform_1, window_bounds = array<i64: 8, 32>}, {pipeline_mode = #tpu.pipeline_mode<synchronous>, transform_indices = @transform_2, window_bounds = array<i64: 32, 48>}, {transform_indices = @transform_3, window_bounds = array<i64: 1, 64, 48>}]} {
    %c0 = arith.constant 0 : index
    %c0_0 = arith.constant 0 : index
    %c0_1 = arith.constant 0 : index
    %0 = vector.load %arg2[%c0, %c0_0, %c0_1] : memref<1x64x8xf32, #tpu.memory_space<vmem>>, vector<1x64x8xf32>
    %1 = vector.shape_cast %0 : vector<1x64x8xf32> to vector<64x8xf32>
    %c0_2 = arith.constant 0 : index
    %c0_3 = arith.constant 0 : index
    %2 = vector.load %arg3[%c0_2, %c0_3] : memref<8x32xf32, #tpu.memory_space<vmem>>, vector<8x32xf32>
    %cst = arith.constant dense<0.000000e+00> : vector<64x32xf32>
    %3 = tpu.matmul %1, %2, %cst {dimension_numbers = #tpu.dot_dimension_numbers<[1], [0], [0], [1], [0, 0, 1, 1], [], []>} : vector<64x8xf32>, vector<8x32xf32>, vector<64x32xf32> -> vector<64x32xf32>
    %c0_4 = arith.constant 0 : index
    %c0_5 = arith.constant 0 : index
    %4 = vector.load %arg4[%c0_4, %c0_5] : memref<32x48xf32, #tpu.memory_space<vmem>>, vector<32x48xf32>
    %cst_6 = arith.constant dense<0.000000e+00> : vector<64x48xf32>
    %5 = tpu.matmul %3, %4, %cst_6 {dimension_numbers = #tpu.dot_dimension_numbers<[1], [0], [0], [1], [0, 0, 1, 1], [], []>} : vector<64x32xf32>, vector<32x48xf32>, vector<64x48xf32> -> vector<64x48xf32>
    %c0_7 = arith.constant 0 : index
    %c0_8 = arith.constant 0 : index
    %c0_9 = arith.constant 0 : index
    %6 = vector.load %arg5[%c0_7, %c0_8, %c0_9] : memref<1x64x48xf32, #tpu.memory_space<vmem>>, vector<1x64x48xf32>
    %7 = vector.shape_cast %6 : vector<1x64x48xf32> to vector<64x48xf32>
    %8 = vector.shape_cast %5 : vector<64x48xf32> to vector<1x64x48xf32>
    tpu.vector_store %arg5[%c0_7, %c0_8, %c0_9], %8 {strides = array<i32>} : memref<1x64x48xf32, #tpu.memory_space<vmem>>, vector<1x64x48xf32>,
    return
  }
  func.func @transform_0(%arg0: i32, %arg1: i32) -> (i32, i32, i32) {
    %c0_i32 = arith.constant 0 : i32
    %c0_i32_0 = arith.constant 0 : i32
    return %arg0, %arg1, %c0_i32 : i32, i32, i32
  }
  func.func @transform_1(%arg0: i32, %arg1: i32) -> (i32, i32) {
    %c0_i32 = arith.constant 0 : i32
    %c0_i32_0 = arith.constant 0 : i32
    %c0_i32_1 = arith.constant 0 : i32
    return %c0_i32, %c0_i32_0 : i32, i32
  }
  func.func @transform_2(%arg0: i32, %arg1: i32) -> (i32, i32) {
    %c0_i32 = arith.constant 0 : i32
    %c0_i32_0 = arith.constant 0 : i32
    %c0_i32_1 = arith.constant 0 : i32
    return %c0_i32, %c0_i32_0 : i32, i32
  }
  func.func @transform_3(%arg0: i32, %arg1: i32) -> (i32, i32, i32) {
    %c0_i32 = arith.constant 0 : i32
    %c0_i32_0 = arith.constant 0 : i32
    return %arg0, %arg1, %c0_i32 : i32, i32, i32
  }
}

</mosaic_0001>

<bundles_post_ra>
// kernel: tpu_custom_call.1
= control target key start
LH: loop header
LB: loop body
LE: loop exit
PB: predicated region body
PF: predicated region fallthrough
CT: control target
= control target key end

     0   :  { %s1383_s0 = inlined_call_operand.hbm [shape: f32[2,128,8], index: 0, kind: input, shape index: {}]   ;;  %s1384_s1 = inlined_call_operand.hbm [shape: f32[8,32], index: 1, kind: input, shape index: {}]   ;;  %s1385_s2 = inlined_call_operand.hbm [shape: f32[32,48], index: 2, kind: input, shape index: {}]   ;;  %s1386_s3 = inlined_call_operand.hbm [shape: f32[2,128,48], index: 3, kind: output, shape index: {}]  }
   0x1   :  { %1396 = sst [smem:[#allocation13_spill]] %s1384_s1 }
   0x2   :  { %1397 = sst [smem:[#allocation14_spill]] %s1385_s2 }
   0x3   :  { %8 = vsyncpa [#allocation3], 0 }
   0x4   :  { %10 = vsyncpa [#allocation3 + $0x1], 0 }
   0x5   :  { %11 = vsyncpa [#allocation6], 0 }
   0x6   :  { %12 = vsyncpa [#allocation4], 0 }
   0x7   :  { %14 = vsyncpa [#allocation4 + $0x1], 0  ;;  %s1064_s12 = smov 0   ;;  %s1066_s13 = smov 0  }
   0x8   :  { %s1068_s14 = smov 0   ;;  %s1070_s15 = smov 0  }
   0x9   :  { %s1072_s16 = smov 0   ;;  %s1074_s17 = smov 0  }
   0xa   :  { %s1076_s18 = smov 0   ;;  %s1078_s19 = smov 0  }
   0xb LB: > { %s643_s20 = sadd.s32 4294967295, %s1034_s19   ;;  %s644_s21 = sadd.s32 4294967294, %s1034_s19   ;;  %s1034_s19 = sphi %s1078_s19, %s20_s19   ;;  %s1030_s18 = sphi %s1076_s18, %s1425_s18   ;;  %s1026_s17 = sphi %s1074_s17, %s1424_s17   ;;  %s1022_s16 = sphi %s1072_s16, %s1423_s16   ;;  %s1018_s15 = sphi %s1070_s15, %s1422_s15   ;;  %s1014_s14 = sphi %s1068_s14, %s1421_s14   ;;  %s1010_s13 = sphi %s1066_s13, %s1420_s13   ;;  %s1006_s12 = sphi %s1064_s12, %s1419_s12  }
   0xc   : > { %p48_p0 = scmp.ne.s32.totalorder %s1014_s14, %s1010_s13  ;;  %p49_p1 = scmp.eq.s32.totalorder %s1034_s19, 0 }
   0xd   : > { %p54_p2 = scmp.ne.s32.totalorder %s1010_s13, %s1006_s12  ;;  %p1112_p3 = scmp.eq.s32.totalorder %s643_s20, 0 }
   0xe   : > { %p122_p4 = scmp.eq.s32.totalorder %s643_s20, 3  ;;  %p1116_p5 = por %p49_p1, %p48_p0 }
   0xf   : > { %s1398_s23 = scalar_select %p1112_p3, 1, 0 }
  0x10   : > { %p128_p6 = scmp.eq.s32.totalorder %s644_s21, 3  ;;  %p1122_p7 = por %p1112_p3, %p54_p2 }
  0x11   : > { %p1126_p8 = por %p122_p4, %p48_p0  ;;  %p645_p10 = scmp.ge.s32.totalorder %s1034_s19, 1 }
  0x12   : > { %s1400_s25 = scalar_select %p1122_p7, 1, 0 }
  0x13   : > { %s1401_s26 = scalar_select %p1126_p8, 1, 0 }
  0x14   : > { %p1130_p9 = por %p128_p6, %p54_p2  ;;  %p135_p11 = scmp.lt.s32.totalorder %s1034_s19, 5 }
  0x15   : > { %s1036_s29 = smov [#allocation5]   ;;  %p772_p13 = scmp.lt.s32.totalorder %s1034_s19, 4 }
  0x16   : > { %s1402_s27 = scalar_select %p1130_p9, 1, 0 }
  0x17   : > { %p1136_p12 = pnand %p645_p10, %p135_p11  ;;  %s148_s30 = sshll.u32 %s1036_s29, 4  ;;  %s149_s30 = int_to_ptr.vmem [resolvable:$true] %s148_s30 }
  0x18   : > { %p1145_p1 = pnand %p772_p13, %p1116_p5  ;;  %s1037_s5 = smov [#allocation7]  }
  0x19   : > { %s1403_s28 = scalar_select %p1136_p12, 1, 0 }
  0x1a   : > { %p755_p0 = pneg %p1136_p12  ;;  %s158_s6 = sshll.u32 %s1037_s5, 4  ;;  %s1155_s6 = int_to_ptr.vmem [resolvable:$true] %s158_s6 }
  0x1b   : > { %s1404_s4 = scalar_select %p1145_p1, 1, 0 }
  0x1c   : > { %p1151_p2 = pnand %p755_p0, %p1112_p3  ;;  %s1406_s1 = sld [smem:[#allocation13_spill]] }
  0x1e   : > { %p848_p5 = pneg %p1151_p2 }
  0x22   : > { %s846_s10 = scalar_lea.hbm %s1406_s1, 128 }
  0x23   : > { %p847_p4 = scmp.ne.s32.totalorder %s1406_s1, %s846_s10  ;;  %p853_p11 = scmp.lt.u32.totalorder %s846_s10, %s1406_s1 }
  0x25   : > { %p849_p6 = pnand %p848_p5, %p847_p4 }
  0x27   : > { %p850_p10 = pneg %p849_p6 }
  0x29   : > { %p855_p13 = pnand %p853_p11, %p850_p10 }
  0x2b   : > { %858 = shalt.err (!%p855_p13)
}
  0x2c   : > { %s859_s29 = scalar_lea.vmem %s149_s30, 128  ;;  %p867_p3 = scmp.lt.s32.totalorder %s149_s30, %s149_s30 }
  0x2d   : > { %p860_p0 = scmp.ne.s32.totalorder %s149_s30, %s859_s29  ;;  %p868_p7 = scmp.lt.s32.totalorder %s859_s29, %s859_s29 }
  0x2f   : > { %p862_p9 = pnand %p860_p0, %p848_p5  ;;  %p869_p12 = por %p868_p7, %p867_p3 }
  0x31   : > { %p863_p8 = pneg %p862_p9 }
  0x33   : > { %p870_p1 = pnand %p869_p12, %p863_p8 }
  0x35   : > { %873 = shalt.err (!%p870_p1)
}
  0x36   : > { %758 = dma.hbm_to_vmem [thread:$0]  (!%p1151_p2), %s1406_s1, 128, %s149_s30, [#allocation6]  }
  0x37   : > { %s1407_s2 = sld [smem:[#allocation14_spill]] }
  0x3d   : > { %s874_s11 = scalar_lea.hbm %s1407_s2, 512 }
  0x3e   : > { %p875_p9 = scmp.ne.s32.totalorder %s1407_s2, %s874_s11  ;;  %p881_p8 = scmp.lt.u32.totalorder %s874_s11, %s1407_s2 }
  0x40   : > { %p877_p3 = pnand %p875_p9, %p848_p5 }
  0x42   : > { %p878_p7 = pneg %p877_p3 }
  0x44   : > { %p883_p12 = pnand %p881_p8, %p878_p7 }
  0x46   : > { %886 = shalt.err (!%p883_p12)
}
  0x47   : > { %s887_s30 = scalar_lea.vmem %s1155_s6, 512  ;;  %p895_p10 = scmp.lt.s32.totalorder %s1155_s6, %s1155_s6 }
  0x48   : > { %p888_p1 = scmp.ne.s32.totalorder %s1155_s6, %s887_s30  ;;  %p896_p11 = scmp.lt.s32.totalorder %s887_s30, %s887_s30 }
  0x4a   : > { %p890_p4 = pnand %p888_p1, %p848_p5  ;;  %p897_p13 = por %p896_p11, %p895_p10 }
  0x4c   : > { %p891_p6 = pneg %p890_p4 }
  0x4e   : > { %p898_p0 = pnand %p897_p13, %p891_p6 }
  0x50   : > { %901 = shalt.err (!%p898_p0)
}
  0x51   : > { %s1393_s5 = smov 128   ;;  %s1394_s8 = smov 8  }
  0x52   : > { %761 = dma.hbm_to_vmem [thread:$0]  (!%p1151_p2), %s1407_s2, 512, %s1155_s6, [#allocation6], %s1393_s5, %s1393_s5, %s1394_s8  }
  0x53   : > { %s29_s11 = sadd.s32 1, %s1026_s17  ;;  %s32_s20 = sadd.s32 1, %s1030_s18 }
  0x54   : > { %p30_p5 = scmp.ge.s32.totalorder %s29_s11, 2  ;;  %s172_s21 = sand.u32 1, %s1014_s14  }
  0x55   : > { %s649_s24 = sshll.u32 %s172_s21, 6  ;;  %s650_s7 = sshll.u32 %s1026_s17, 3 }
  0x56   : > { %s1427_s11 = smov (%p30_p5, %s29_s11), 0  ;;  %s1429_s20 = smov (!%p30_p5, %s32_s20), %s1030_s18 }
  0x57   : > { %1408 = sst [smem:[#allocation12_spill]] %s1427_s11  ;;  %s37_s29 = ssub.s32 %s1026_s17, %s1427_s11 }
  0x58   : > { %p34_p9 = scmp.ge.s32.totalorder %s1429_s20, 2  ;;  %s651_s30 = sshll.u32 %s1030_s18, 4 }
  0x59   : > { %s176_s22 = scalar_lea.vmem [#allocation2], %s649_s24  ;;  %s182_s6 = sadd.s32 %s651_s30, %s650_s7 }
  0x5a   : > { %s185_s1 = sshll.u32 %s176_s22, 4  ;;  %s1431_s20 = smov (%p34_p9, %s1429_s20), 0  ;;  %s1219_s1 = int_to_ptr.vmem [resolvable:$true] %s185_s1 }
  0x5b   : > { %s36_s9 = ssub.s32 %s1030_s18, %s1431_s20  ;;  %s652_s10 = sshll.u32 %s182_s6, 7 }
  0x5c   : > { %s1223_s5 = sor.u32 %s37_s29, %s36_s9  ;;  %s1228_s11 = scalar_lea.hbm %s1383_s0, %s652_s10 }
  0x5d   : > { %p39_p2 = scmp.eq.s32.totalorder %s1223_s5, 0  ;;  %s1231_s22 = scalar_lea.sflag [#allocation3], %s172_s21 }
  0x5e   : > { %s902_s24 = scalar_lea.hbm %s1228_s11, 1024  ;;  %p1409_p7 = scmp.ne.s32.totalorder %s1404_s4, 0 }
  0x5f   : > { %p903_p3 = scmp.ne.s32.totalorder %s1228_s11, %s902_s24  ;;  %s907_s8 = scalar_lea.hbm %s1383_s0, 4096 }
  0x60   : > { %p904_p8 = pneg %p1409_p7  ;;  %p908_p4 = scmp.lt.u32.totalorder %s1228_s11, %s1383_s0 }
  0x61   : > { %p909_p6 = scmp.lt.u32.totalorder %s907_s8, %s902_s24  ;;  %p911_p11 = scmp.lt.u32.totalorder %s902_s24, %s1228_s11 }
  0x62   : > { %p905_p12 = pnand %p904_p8, %p903_p3 }
  0x63   : > { %p910_p10 = por %p909_p6, %p908_p4 }
  0x64   : > { %p906_p1 = pneg %p905_p12 }
  0x65   : > { %p912_p13 = por %p911_p11, %p910_p10 }
  0x67   : > { %p913_p0 = pnand %p912_p13, %p906_p1 }
  0x69   : > { %916 = shalt.err (!%p913_p0)
}
  0x6a   : > { %s917_s21 = scalar_lea.vmem %s1219_s1, 1024  ;;  %s1040_s6 = smov [#allocation2]  }
  0x6b   : > { %p918_p5 = scmp.ne.s32.totalorder %s1219_s1, %s917_s21  ;;  %s922_s9 = sshll.u32 %s1040_s6, 4  ;;  %s923_s9 = int_to_ptr.vmem [resolvable:$false] %s922_s9 }
  0x6c   : > { %s924_s10 = scalar_lea.vmem %s923_s9, 2048  ;;  %p925_p12 = scmp.lt.s32.totalorder %s1219_s1, %s923_s9 }
  0x6d   : > { %p920_p9 = pnand %p918_p5, %p904_p8  ;;  %p926_p4 = scmp.lt.s32.totalorder %s924_s10, %s917_s21 }
  0x6f   : > { %p921_p3 = pneg %p920_p9  ;;  %p927_p6 = por %p926_p4, %p925_p12 }
  0x71   : > { %p928_p10 = pnand %p927_p6, %p921_p3 }
  0x73   : > { %931 = shalt.err (!%p928_p10)
}
  0x74   : > { %s1410_s24 = smov 8   ;;  %s1411_s29 = smov 128  }
  0x75   : > { %765 = dma.hbm_to_vmem [thread:$0]  (!%p1409_p7), %s1228_s11, 1024, %s1219_s1, %s1231_s22, %s1411_s29, %s1411_s29, %s1410_s24  }
  0x76   : > { %s1412_s2 = sadd.s32 1, %s1014_s14  ;;  %p1413_p8 = scmp.ne.s32.totalorder %s1403_s28, 0 }
  0x77   : > { %s1267_s8 = scalar_select %p39_p2, %s1014_s14, %s1412_s2  }
  0x78   : > { %197 = sbr.rel (%p1413_p8) target bundleno = 588 (0x24c), region = 32  ;;  %s1272_s4 = sand.u32 (!%p1413_p8), 1, %s1010_s13  }
  0x79   : > { %s654_s7 = sshll.u32 (!%p1413_p8), %s1272_s4, 6  ;;  %s200_s30 = scalar_lea.sflag (!%p1413_p8), [#allocation3], %s1272_s4 }
  0x7a   : > { %s1278_s21 = scalar_lea.vmem (!%p1413_p8), [#allocation2], %s654_s7  ;;  %p1414_p7 = scmp.ne.s32.totalorder (!%p1413_p8), %s1400_s25, 0 }
  0x7f   : > { %993 = dma.done.wait (%p1414_p7), %s200_s30, 1024  }
  0x80   : > { %995 = vsyncadd (%p1414_p7), %s200_s30, 4294966272  ;;  %p1415_p2 = scmp.ne.s32.totalorder %s1398_s23, 0 }
  0x82   : > { %997 = dma.done.wait (%p1415_p2), [#allocation6], 640  }
  0x83   : > { %999 = vsyncadd (%p1415_p2), [#allocation6], 4294966656  ;;  %vm245_vm0 = vcmask 64512   ;;  %v244_v0 = vld [vmem:[#allocation5] sm:$0xff]  ;;  %v237_v2 = vld [vmem:[%s1278_s21 + $0x8] sm:$0xff]  ;;  %vm379_vm1 = vcmask 261120  }
  0x84   : > { %v236_v1 = vld [vmem:[%s1278_s21] sm:$0xff]  ;;  %701 = vmatprep.subr.mxu0 %v244_v0  ;;  %v238_v3 = vld [vmem:[%s1278_s21 + $0x10] sm:$0xff]  ;;  %v375_v4 = vld [vmem:[#allocation7] sm:$0xff]  ;;  %vm509_vm2 = vcmask 392192   ;;  %s233_s1 = scalar_lea.vmem [#allocation8], %s654_s7  ;;  %s675_s23 = sshll.u32 %s1018_s15, 3 }
  0x85   : > { %703 = vmatprep.mubr.msk.f32.mxu0 %vm245_vm0, %v236_v1  ;;  %702 = vmatpush3.msra.mxu0 %v244_v0  ;;  %v376_v5 = vld [vmem:[#allocation7 + $0x8] sm:$0xff]  ;;  %v377_v6 = vld [vmem:[#allocation7 + $0x10] sm:$0xff]  ;;  %v378_v9 = vld [vmem:[#allocation7 + $0x18] sm:$0xff]  ;;  %s676_s25 = sshll.u32 %s1022_s16, 4  ;;  %s534_s5 = sshll.u32 %s233_s1, 4  ;;  %s1321_s5 = int_to_ptr.vmem [resolvable:$true] %s534_s5 }
  0x86   : > { %704 = vmatmul.mubr.msk.f32.vlgmr.msra.gmra.mrb[0].mxu0 %vm245_vm0, %v237_v2  ;;  %v239_v7 = vld [vmem:[%s1278_s21 + $0x18] sm:$0xff]  ;;  %v735_v8 = vpack.c.bf16 %v376_v5, %v375_v4  ;;  %v240_v10 = vld [vmem:[%s1278_s21 + $0x20] sm:$0xff]  ;;  %v739_v11 = vpack.c.bf16 %v378_v9, %v377_v6  ;;  %v241_v12 = vld [vmem:[%s1278_s21 + $0x28] sm:$0xff]  ;;  %s531_s28 = sadd.s32 %s676_s25, %s675_s23  ;;  %s519_s6 = scalar_lea.sflag [#allocation4], %s1272_s4 }
  0x87   : > { %706 = vmatprep.mubr.msk.f32.mxu0 %vm245_vm0, %v238_v3  ;;  %v242_v13 = vld [vmem:[%s1278_s21 + $0x30] sm:$0xff]  ;;  %v243_v14 = vld [vmem:[%s1278_s21 + $0x38] sm:$0xff]  ;;  %s677_s11 = sshll.u32 %s531_s28, 7  ;;  %s932_s9 = scalar_lea.vmem %s1321_s5, 1024 }
  0x88   : > { %736 = vmatprep.subr.bf16.mxu1 %v735_v8  ;;  %s1327_s22 = scalar_lea.hbm %s1386_s3, %s677_s11  ;;  %p933_p1 = scmp.ne.s32.totalorder %s1321_s5, %s932_s9 }
  0x89   : > { %738 = vmatpush3.bf16.msra.mxu1 %v735_v8  ;;  %p1416_p11 = scmp.ne.s32.totalorder %s1401_s26, 0  ;;  %s1041_s10 = smov [#allocation8]  }
  0x8a   : > { %707 = vmatmul.mubr.msk.f32.gmra.mrb[2].mxu0 %vm245_vm0, %v239_v7  ;;  %740 = vmatprep.subr.bf16.mxu1 %v739_v11  ;;  %s936_s24 = sshll.u32 %s1041_s10, 4  ;;  %s937_s24 = int_to_ptr.vmem [resolvable:$false] %s936_s24 }
  0x8b   : > { %709 = vmatprep.mubr.msk.f32.mxu0 %vm245_vm0, %v240_v10  ;;  %p934_p13 = pnand %p933_p1, %p1416_p11  ;;  %s938_s29 = scalar_lea.vmem %s937_s24, 2048 }
  0x8c   : > { %p939_p5 = scmp.lt.s32.totalorder %s1321_s5, %s937_s24  ;;  %p940_p9 = scmp.lt.s32.totalorder %s938_s29, %s932_s9 }
  0x8d   : > { %742 = vmatpush3.bf16.msra.mxu1 %v739_v11  ;;  %p935_p0 = pneg %p934_p13 }
  0x8e   : > { %710 = vmatmul.mubr.msk.f32.gmra.mrb[4].mxu0 %vm245_vm0, %v241_v12  ;;  %p941_p3 = por %p940_p9, %p939_p5 }
  0x8f   : > { %712 = vmatprep.mubr.msk.f32.mxu0 %vm245_vm0, %v242_v13 }
  0x90   : > { %p942_p12 = pnand %p941_p3, %p935_p0 }
  0x92   : > { %713 = vmatmul.mubr.msk.f32.gmra.mrb[6].mxu0 %vm245_vm0, %v243_v14 }
 0x159   : > { %v705_v15 = vpop.f32.mrb[0].mxu0 }
 0x15a   : > { %v336_v16 = vpop.f32.mrb[1].mxu0 }
 0x15b   : > { %723 = vmatprep.mubr.msk.f32.mxu1 %vm379_vm1, %v336_v16 }
 0x15c   : > { %724 = vmatmul.mubr.msk.f32.vlgmr.msra.gmra.mrb[0].mxu1 %vm379_vm1, %v705_v15 }
 0x15d   : > { %v708_v17 = vpop.f32.mrb[2].mxu0 }
 0x15e   : > { %v346_v18 = vpop.f32.mrb[3].mxu0 }
 0x15f   : > { %726 = vmatprep.mubr.msk.f32.mxu1 %vm379_vm1, %v346_v18 }
 0x160   : > { %727 = vmatmul.mubr.msk.f32.gmra.mrb[2].mxu1 %vm379_vm1, %v708_v17 }
 0x161   : > { %v711_v19 = vpop.f32.mrb[4].mxu0 }
 0x162   : > { %v356_v20 = vpop.f32.mrb[5].mxu0 }
 0x163   : > { %729 = vmatprep.mubr.msk.f32.mxu1 %vm379_vm1, %v356_v20 }
 0x164   : > { %730 = vmatmul.mubr.msk.f32.gmra.mrb[4].mxu1 %vm379_vm1, %v711_v19 }
 0x165   : > { %v714_v21 = vpop.f32.mrb[6].mxu0 }
 0x166   : > { %v366_v22 = vpop.f32.mrb[7].mxu0 }
 0x167   : > { %732 = vmatprep.mubr.msk.f32.mxu1 %vm379_vm1, %v366_v22 }
 0x168   : > { %733 = vmatmul.mubr.msk.f32.gmra.mrb[6].mxu1 %vm379_vm1, %v714_v21 }
 0x22f   : > { %v725_v23 = vpop.f32.mrb[0].mxu1 }
 0x230   : > { %511 = vst.msk [vmem:[%s233_s1 + $0x8] sm:$0xff] %vm509_vm2, %v725_v23  ;;  %v470_v24 = vpop.f32.mrb[1].mxu1 }
 0x231   : > { %510 = vst.msk [vmem:[%s233_s1] sm:$0xff] %vm509_vm2, %v470_v24 }
 0x233   : > { %v728_v25 = vpop.f32.mrb[2].mxu1 }
 0x234   : > { %513 = vst.msk [vmem:[%s233_s1 + $0x18] sm:$0xff] %vm509_vm2, %v728_v25  ;;  %v480_v26 = vpop.f32.mrb[3].mxu1 }
 0x235   : > { %512 = vst.msk [vmem:[%s233_s1 + $0x10] sm:$0xff] %vm509_vm2, %v480_v26 }
 0x237   : > { %v731_v27 = vpop.f32.mrb[4].mxu1 }
 0x238   : > { %515 = vst.msk [vmem:[%s233_s1 + $0x28] sm:$0xff] %vm509_vm2, %v731_v27  ;;  %v490_v28 = vpop.f32.mrb[5].mxu1 }
 0x239   : > { %514 = vst.msk [vmem:[%s233_s1 + $0x20] sm:$0xff] %vm509_vm2, %v490_v28 }
 0x23b   : > { %v734_v29 = vpop.f32.mrb[6].mxu1 }
 0x23c   : > { %517 = vst.msk [vmem:[%s233_s1 + $0x38] sm:$0xff] %vm509_vm2, %v734_v29  ;;  %v500_v30 = vpop.f32.mrb[7].mxu1 }
 0x23d   : > { %516 = vst.msk [vmem:[%s233_s1 + $0x30] sm:$0xff] %vm509_vm2, %v500_v30 }
 0x23e   : > { %945 = shalt.err (!%p942_p12)
}
 0x23f   : > { %s946_s2 = scalar_lea.hbm %s1327_s22, 1024  ;;  %s950_s21 = scalar_lea.hbm %s1386_s3, 4096 }
 0x240   : > { %p947_p4 = scmp.ne.s32.totalorder %s1327_s22, %s946_s2  ;;  %p951_p8 = scmp.lt.u32.totalorder %s1327_s22, %s1386_s3 }
 0x241   : > { %p952_p7 = scmp.lt.u32.totalorder %s950_s21, %s946_s2  ;;  %p954_p1 = scmp.lt.u32.totalorder %s946_s2, %s1327_s22 }
 0x242   : > { %p948_p6 = pnand %p947_p4, %p1416_p11 }
 0x243   : > { %p953_p2 = por %p952_p7, %p951_p8 }
 0x244   : > { %p949_p10 = pneg %p948_p6 }
 0x245   : > { %p955_p13 = por %p954_p1, %p953_p2 }
 0x247   : > { %p956_p0 = pnand %p955_p13, %p949_p10 }
 0x249   : > { %959 = shalt.err (!%p956_p0)
}
 0x24a   : > { %s1042_s25 = smov 128   ;;  %s1043_s28 = smov 8  }
 0x24b   : > { %753 = dma.vmem_to_hbm [thread:$0]  (%p1416_p11), %s1321_s5, 1024, %s1327_s22, %s519_s6, %s1042_s25, %s1042_s25, %s1043_s28  }
 0x24c PF: > { %p775_p5 = scmp.ge.s32.totalorder %s1034_s19, 2  ;;  %s549_s11 = sand.u32 1, %s1006_s12  }
 0x24d   : > { %p1417_p9 = scmp.ne.s32.totalorder %s1402_s27, 0  ;;  %s550_s15 = scalar_lea.sflag [#allocation4], %s549_s11 }
 0x24f   : > { %p767_p3 = pnand %p775_p5, %p1417_p9 }
 0x251   : > { %1001 = dma.done.wait (!%p767_p3), %s550_s15, 1024  }
 0x252   : > { %1003 = vsyncadd (!%p767_p3), %s550_s15, 4294966272  ;;  %s20_s19 = sadd.s32 1, %s1034_s19   ;;  %s1418_s26 = sld [smem:[#allocation12_spill]] }
 0x253   : > { %p17_p12 = scmp.ge.s32.totalorder %s20_s19, 6   ;;  %s1419_s12 = smov %s1010_s13 }
 0x254   : > { %s1420_s13 = smov %s1014_s14  ;;  %s1421_s14 = smov %s1267_s8 }
 0x255   : > { %s1422_s15 = smov %s1026_s17  ;;  %s1423_s16 = smov %s1030_s18 }
 0x256   : > { %s1425_s18 = smov %s1431_s20  ;;  %19 = sbr.rel (!%p17_p12) target bundleno = 11 (0xb), region = 85 }
 0x258   : > { %s1424_s17 = smov %s1418_s26 }
 0x25d   :  { %555 = vsyncpa [#allocation3], 1 }
 0x25e   :  { %557 = vsyncpa [#allocation3 + $0x1], 1 }
 0x25f   :  { %558 = vsyncpa [#allocation6], 1 }
 0x260   :  { %559 = vsyncpa [#allocation4], 1 }
 0x261   :  { %561 = vsyncpa [#allocation4 + $0x1], 1 }

</bundles_post_ra>
